<compile_context>
chip_gen: v7x
topology: tpu7x:2x2x1
jax: 0.10.0
libtpu: 0.0.40
codegen_flags: <defaults>
</compile_context>

<pallas_src>
import jax
import jax.numpy as jnp
from jax.experimental import pallas as pl
from jax.experimental.pallas import tpu as pltpu


def _round_up(x, m):
    return (x + m - 1) // m * m


def nli_classifier_kernel(prem_ref, hypo_ref, w1_ref, w2_ref, w3_ref, b_ref,
                          out_ref, feat_ref):
    prem = prem_ref[...].astype(jnp.float32)
    hypo = hypo_ref[...].astype(jnp.float32)
    H = prem.shape[1]
    fc = w2_ref.shape[0]

    # Build the [TB, 4H] feature slab with four static lane-offset stores so a
    # single full-depth K=4H matmul feeds the MXU.
    feat_ref[:, 0 * H:1 * H] = prem
    feat_ref[:, 1 * H:2 * H] = hypo
    feat_ref[:, 2 * H:3 * H] = jnp.abs(prem - hypo)
    feat_ref[:, 3 * H:4 * H] = prem * hypo

    b = b_ref[...].astype(jnp.float32)      # packed biases [3, max(fc, out_pad)]
    w1 = w1_ref[...]
    w2 = w2_ref[...]
    w3 = w3_ref[...]

    feat = feat_ref[...]
    h1 = jnp.dot(feat.astype(w1.dtype), w1,
                 preferred_element_type=jnp.float32) + b[0:1, :fc]
    h1 = jnp.maximum(h1, 0.0)               # ReLU (config.activation default)

    h2 = jnp.dot(h1.astype(w2.dtype), w2,
                 preferred_element_type=jnp.float32) + b[1:2, :fc]
    h2 = jnp.maximum(h2, 0.0)

    out = jnp.dot(h2.astype(w3.dtype), w3,
                  preferred_element_type=jnp.float32) + b[2:3, :w3.shape[1]]
    out_ref[...] = out.astype(out_ref.dtype)


def pack_params(params, *, out_pad_to=128, param_dtype=jnp.float32):
    """Re-pack raw FCClassifier params for the kernel.

    - zero-pads W3/b3 to a lane-dense (multiple-of-128) output width,
    - packs the three biases into a single [3, BP] array (fewer input DMAs),
    - optionally casts weights to bf16 (kernel accumulates in f32).
    """
    fc = params["w2"].shape[0]
    out_dim = params["w3"].shape[1]
    out_pad = _round_up(out_dim, out_pad_to)

    w3p = jnp.zeros((fc, out_pad), params["w3"].dtype)
    w3p = w3p.at[:, :out_dim].set(params["w3"])

    bp_width = max(fc, out_pad)
    b_pack = jnp.zeros((3, bp_width), jnp.float32)
    b_pack = b_pack.at[0, :fc].set(params["b1"].reshape(-1))
    b_pack = b_pack.at[1, :fc].set(params["b2"].reshape(-1))
    b_pack = b_pack.at[2, :out_dim].set(params["b3"].reshape(-1))

    return {
        "w1": params["w1"].astype(param_dtype),
        "w2": params["w2"].astype(param_dtype),
        "w3p": w3p.astype(param_dtype),
        "b_pack": b_pack,
        "out_dim": out_dim,
    }


def nli_classifier(prem, hypo, packed, *, block_b=256):
    """FCClassifier forward: out = MLP(concat([p, h, |p-h|, p*h]))."""
    B, H = prem.shape
    w1, w2, w3p, b_pack = packed["w1"], packed["w2"], packed["w3p"], packed["b_pack"]
    out_dim = packed["out_dim"]
    fc = w2.shape[0]
    out_pad = w3p.shape[1]
    bp_width = b_pack.shape[1]
    assert w1.shape[0] == 4 * H, "w1 must have 4*hidden_dim rows"

    # Batch tiling: TB rows per grid step (parallel axis -> both TCs on v7x).
    TB = min(block_b, _round_up(B, 8))
    Bp = _round_up(B, TB)
    if Bp != B:
        pad = Bp - B
        prem = jnp.pad(prem, ((0, pad), (0, 0)))
        hypo = jnp.pad(hypo, ((0, pad), (0, 0)))

    out = pl.pallas_call(
        nli_classifier_kernel,
        out_shape=jax.ShapeDtypeStruct((Bp, out_pad), jnp.float32),
        grid_spec=pltpu.PrefetchScalarGridSpec(
            num_scalar_prefetch=0,
            grid=(Bp // TB,),
            in_specs=[
                pl.BlockSpec((TB, H), lambda i: (i, 0)),          # prem
                pl.BlockSpec((TB, H), lambda i: (i, 0)),          # hypo
                pl.BlockSpec((4 * H, fc), lambda i: (0, 0)),      # w1 (whole)
                pl.BlockSpec((fc, fc), lambda i: (0, 0)),         # w2 (whole)
                pl.BlockSpec((fc, out_pad), lambda i: (0, 0)),    # w3 padded
                pl.BlockSpec((3, bp_width), lambda i: (0, 0)),    # packed biases
            ],
            out_specs=pl.BlockSpec((TB, out_pad), lambda i: (i, 0)),
            scratch_shapes=[pltpu.VMEM((TB, 4 * H), jnp.float32)],
        ),
        compiler_params=pltpu.CompilerParams(
            dimension_semantics=("parallel",)),
    )(prem, hypo, w1, w2, w3p, b_pack)
    return out[:B, :out_dim]


def init_params(key, hidden_dim, fc_dim, out_dim):
    seq_in_size = 4 * hidden_dim              # encoder_type != BiLSTMMaxPool/HBMP
    k1, k2, k3, k4, k5, k6 = jax.random.split(key, 6)
    params = {
        "w1": jax.random.normal(k1, (seq_in_size, fc_dim), jnp.float32) * 0.05,
        "b1": jax.random.normal(k2, (1, fc_dim), jnp.float32) * 0.01,
        "w2": jax.random.normal(k3, (fc_dim, fc_dim), jnp.float32) * 0.05,
        "b2": jax.random.normal(k4, (1, fc_dim), jnp.float32) * 0.01,
        "w3": jax.random.normal(k5, (fc_dim, out_dim), jnp.float32) * 0.05,
        "b3": jax.random.normal(k6, (1, out_dim), jnp.float32) * 0.01,
    }
    return params


def reference(prem, hypo, params):
    feats = jnp.concatenate(
        [prem, hypo, jnp.abs(prem - hypo), prem * hypo], axis=1)
    h1 = jnp.maximum(feats @ params["w1"] + params["b1"], 0.0)
    h2 = jnp.maximum(h1 @ params["w2"] + params["b2"], 0.0)
    return h2 @ params["w3"] + params["b3"]


if __name__ == "__main__":
    batch = 8
    hidden_dim = 32     # sentence-embedding size -> seq_in_size = 128
    fc_dim = 128
    out_dim = 3         # entailment / neutral / contradiction

    key = jax.random.PRNGKey(0)
    kp, kh, kw = jax.random.split(key, 3)
    prem = jax.random.normal(kp, (batch, hidden_dim), jnp.float32)
    hypo = jax.random.normal(kh, (batch, hidden_dim), jnp.float32)
    params = init_params(kw, hidden_dim, fc_dim, out_dim)

    # For v6e/v7x production use: pack_params(params, param_dtype=jnp.bfloat16)
    packed = pack_params(params)

    out = nli_classifier(prem, hypo, packed)
    out = jax.block_until_ready(out)

    ref = reference(prem, hypo, params)
    assert out.shape == (batch, out_dim)
    assert jnp.allclose(out, ref, atol=1e-4, rtol=1e-4)

    print("KERNEL_OK")
</pallas_src>

<mosaic_0001>
module attributes {stable_mosaic.version = 11 : i64} {
  func.func @nli_classifier_kernel(%arg0: i32, %arg1: memref<8x32xf32, #tpu.memory_space<vmem>>, %arg2: memref<8x32xf32, #tpu.memory_space<vmem>>, %arg3: memref<128x128xf32, #tpu.memory_space<vmem>>, %arg4: memref<128x128xf32, #tpu.memory_space<vmem>>, %arg5: memref<128x128xf32, #tpu.memory_space<vmem>>, %arg6: memref<3x128xf32, #tpu.memory_space<vmem>>, %arg7: memref<8x128xf32, #tpu.memory_space<vmem>>, %arg8: memref<8x128xf32, #tpu.memory_space<vmem>>) attributes {dimension_semantics = [#tpu.dimension_semantics<parallel>], iteration_bounds = array<i64: 1>, scalar_prefetch = 0 : i64, scratch_operands = 1 : i64, tpu.core_type = #tpu.core_type<tc>, window_params = [{transform_indices = @transform_0, window_bounds = array<i64: 8, 32>}, {transform_indices = @transform_1, window_bounds = array<i64: 8, 32>}, {pipeline_mode = #tpu.pipeline_mode<synchronous>, transform_indices = @transform_2, window_bounds = array<i64: 128, 128>}, {pipeline_mode = #tpu.pipeline_mode<synchronous>, transform_indices = @transform_3, window_bounds = array<i64: 128, 128>}, {pipeline_mode = #tpu.pipeline_mode<synchronous>, transform_indices = @transform_4, window_bounds = array<i64: 128, 128>}, {pipeline_mode = #tpu.pipeline_mode<synchronous>, transform_indices = @transform_5, window_bounds = array<i64: 3, 128>}, {transform_indices = @transform_6, window_bounds = array<i64: 8, 128>}]} {
    %c0 = arith.constant 0 : index
    %c0_0 = arith.constant 0 : index
    %0 = vector.load %arg1[%c0, %c0_0] : memref<8x32xf32, #tpu.memory_space<vmem>>, vector<8x32xf32>
    %c0_1 = arith.constant 0 : index
    %c0_2 = arith.constant 0 : index
    %1 = vector.load %arg2[%c0_1, %c0_2] : memref<8x32xf32, #tpu.memory_space<vmem>>, vector<8x32xf32>
    %c0_3 = arith.constant 0 : index
    %c0_4 = arith.constant 0 : index
    %2 = vector.load %arg8[%c0_3, %c0_4] : memref<8x128xf32, #tpu.memory_space<vmem>>, vector<8x32xf32>
    tpu.vector_store %arg8[%c0_3, %c0_4], %0 {strides = array<i32>} : memref<8x128xf32, #tpu.memory_space<vmem>>, vector<8x32xf32>,
    %c0_5 = arith.constant 0 : index
    %c32 = arith.constant 32 : index
    %3 = vector.load %arg8[%c0_5, %c32] : memref<8x128xf32, #tpu.memory_space<vmem>>, vector<8x32xf32>
    tpu.vector_store %arg8[%c0_5, %c32], %1 {strides = array<i32>} : memref<8x128xf32, #tpu.memory_space<vmem>>, vector<8x32xf32>,
    %4 = arith.subf %0, %1 : vector<8x32xf32>
    %5 = math.absf %4 : vector<8x32xf32>
    %c0_6 = arith.constant 0 : index
    %c64 = arith.constant 64 : index
    %6 = vector.load %arg8[%c0_6, %c64] : memref<8x128xf32, #tpu.memory_space<vmem>>, vector<8x32xf32>
    tpu.vector_store %arg8[%c0_6, %c64], %5 {strides = array<i32>} : memref<8x128xf32, #tpu.memory_space<vmem>>, vector<8x32xf32>,
    %7 = arith.mulf %0, %1 : vector<8x32xf32>
    %c0_7 = arith.constant 0 : index
    %c96 = arith.constant 96 : index
    %8 = vector.load %arg8[%c0_7, %c96] : memref<8x128xf32, #tpu.memory_space<vmem>>, vector<8x32xf32>
    tpu.vector_store %arg8[%c0_7, %c96], %7 {strides = array<i32>} : memref<8x128xf32, #tpu.memory_space<vmem>>, vector<8x32xf32>,
    %c0_8 = arith.constant 0 : index
    %c0_9 = arith.constant 0 : index
    %9 = vector.load %arg6[%c0_8, %c0_9] : memref<3x128xf32, #tpu.memory_space<vmem>>, vector<3x128xf32>
    %c0_10 = arith.constant 0 : index
    %c0_11 = arith.constant 0 : index
    %10 = vector.load %arg3[%c0_10, %c0_11] : memref<128x128xf32, #tpu.memory_space<vmem>>, vector<128x128xf32>
    %c0_12 = arith.constant 0 : index
    %c0_13 = arith.constant 0 : index
    %11 = vector.load %arg4[%c0_12, %c0_13] : memref<128x128xf32, #tpu.memory_space<vmem>>, vector<128x128xf32>
    %c0_14 = arith.constant 0 : index
    %c0_15 = arith.constant 0 : index
    %12 = vector.load %arg5[%c0_14, %c0_15] : memref<128x128xf32, #tpu.memory_space<vmem>>, vector<128x128xf32>
    %c0_16 = arith.constant 0 : index
    %c0_17 = arith.constant 0 : index
    %13 = vector.load %arg8[%c0_16, %c0_17] : memref<8x128xf32, #tpu.memory_space<vmem>>, vector<8x128xf32>
    %cst = arith.constant dense<0.000000e+00> : vector<8x128xf32>
    %14 = tpu.matmul %13, %10, %cst {dimension_numbers = #tpu.dot_dimension_numbers<[1], [0], [0], [1], [0, 0, 1, 1], [], []>} : vector<8x128xf32>, vector<128x128xf32>, vector<8x128xf32> -> vector<8x128xf32>
    %15 = vector.extract_strided_slice %9 {offsets = [0, 0], sizes = [1, 128], strides = [1, 1]} : vector<3x128xf32> to vector<1x128xf32>
    %16 = vector.broadcast %15 : vector<1x128xf32> to vector<8x128xf32>
    %17 = arith.addf %14, %16 : vector<8x128xf32>
    %cst_18 = arith.constant 0.000000e+00 : f32
    %18 = vector.broadcast %cst_18 : f32 to vector<8x128xf32>
    %19 = arith.maximumf %17, %18 : vector<8x128xf32>
    %cst_19 = arith.constant dense<0.000000e+00> : vector<8x128xf32>
    %20 = tpu.matmul %19, %11, %cst_19 {dimension_numbers = #tpu.dot_dimension_numbers<[1], [0], [0], [1], [0, 0, 1, 1], [], []>} : vector<8x128xf32>, vector<128x128xf32>, vector<8x128xf32> -> vector<8x128xf32>
    %21 = vector.extract_strided_slice %9 {offsets = [1, 0], sizes = [1, 128], strides = [1, 1]} : vector<3x128xf32> to vector<1x128xf32>
    %22 = vector.broadcast %21 : vector<1x128xf32> to vector<8x128xf32>
    %23 = arith.addf %20, %22 : vector<8x128xf32>
    %cst_20 = arith.constant 0.000000e+00 : f32
    %24 = vector.broadcast %cst_20 : f32 to vector<8x128xf32>
    %25 = arith.maximumf %23, %24 : vector<8x128xf32>
    %cst_21 = arith.constant dense<0.000000e+00> : vector<8x128xf32>
    %26 = tpu.matmul %25, %12, %cst_21 {dimension_numbers = #tpu.dot_dimension_numbers<[1], [0], [0], [1], [0, 0, 1, 1], [], []>} : vector<8x128xf32>, vector<128x128xf32>, vector<8x128xf32> -> vector<8x128xf32>
    %27 = vector.extract_strided_slice %9 {offsets = [2, 0], sizes = [1, 128], strides = [1, 1]} : vector<3x128xf32> to vector<1x128xf32>
    %28 = vector.broadcast %27 : vector<1x128xf32> to vector<8x128xf32>
    %29 = arith.addf %26, %28 : vector<8x128xf32>
    %c0_22 = arith.constant 0 : index
    %c0_23 = arith.constant 0 : index
    %30 = vector.load %arg7[%c0_22, %c0_23] : memref<8x128xf32, #tpu.memory_space<vmem>>, vector<8x128xf32>
    tpu.vector_store %arg7[%c0_22, %c0_23], %29 {strides = array<i32>} : memref<8x128xf32, #tpu.memory_space<vmem>>, vector<8x128xf32>,
    return
  }
  func.func @transform_0(%arg0: i32) -> (i32, i32) {
    %c0_i32 = arith.constant 0 : i32
    %c0_i32_0 = arith.constant 0 : i32
    return %arg0, %c0_i32 : i32, i32
  }
  func.func @transform_1(%arg0: i32) -> (i32, i32) {
    %c0_i32 = arith.constant 0 : i32
    %c0_i32_0 = arith.constant 0 : i32
    return %arg0, %c0_i32 : i32, i32
  }
  func.func @transform_2(%arg0: i32) -> (i32, i32) {
    %c0_i32 = arith.constant 0 : i32
    %c0_i32_0 = arith.constant 0 : i32
    %c0_i32_1 = arith.constant 0 : i32
    return %c0_i32, %c0_i32_0 : i32, i32
  }
  func.func @transform_3(%arg0: i32) -> (i32, i32) {
    %c0_i32 = arith.constant 0 : i32
    %c0_i32_0 = arith.constant 0 : i32
    %c0_i32_1 = arith.constant 0 : i32
    return %c0_i32, %c0_i32_0 : i32, i32
  }
  func.func @transform_4(%arg0: i32) -> (i32, i32) {
    %c0_i32 = arith.constant 0 : i32
    %c0_i32_0 = arith.constant 0 : i32
    %c0_i32_1 = arith.constant 0 : i32
    return %c0_i32, %c0_i32_0 : i32, i32
  }
  func.func @transform_5(%arg0: i32) -> (i32, i32) {
    %c0_i32 = arith.constant 0 : i32
    %c0_i32_0 = arith.constant 0 : i32
    %c0_i32_1 = arith.constant 0 : i32
    return %c0_i32, %c0_i32_0 : i32, i32
  }
  func.func @transform_6(%arg0: i32) -> (i32, i32) {
    %c0_i32 = arith.constant 0 : i32
    %c0_i32_0 = arith.constant 0 : i32
    return %arg0, %c0_i32 : i32, i32
  }
}

</mosaic_0001>

<bundles_post_ra>
// kernel: tpu_custom_call.1
= control target key start
LH: loop header
LB: loop body
LE: loop exit
PB: predicated region body
PF: predicated region fallthrough
CT: control target
= control target key end

     0   :  { %11 = vsyncpa [#allocation4], 0  ;;  %s950_s0 = inlined_call_operand.hbm [shape: f32[8,32], index: 0, kind: input, shape index: {}]   ;;  %s951_s1 = inlined_call_operand.hbm [shape: f32[8,32], index: 1, kind: input, shape index: {}]   ;;  %s952_s2 = inlined_call_operand.hbm [shape: f32[128,128], index: 2, kind: input, shape index: {}]   ;;  %s953_s3 = inlined_call_operand.hbm [shape: f32[128,128], index: 3, kind: input, shape index: {}]   ;;  %s954_s4 = inlined_call_operand.hbm [shape: f32[128,128], index: 4, kind: input, shape index: {}]   ;;  %s955_s5 = inlined_call_operand.vmem [shape: f32[3,128], index: 5, kind: input, shape index: {}]   ;;  %s956_s6 = inlined_call_operand.hbm [shape: f32[8,128], index: 6, kind: output, shape index: {}]  }
   0x1   :  { %12 = vsyncpa [#allocation7], 0 }
   0x2   :  { %13 = vsyncpa [#allocation10], 0 }
   0x3   :  { %14 = vsyncpa [#allocation5], 0  ;;  %s787_s21 = smov [#allocation6]   ;;  %s647_s25 = scalar_lea.hbm %s951_s1, 128 }
   0x4   :  { %s31_s22 = sshll.u32 %s787_s21, 4  ;;  %p648_p0 = scmp.ne.s32.totalorder %s951_s1, %s647_s25  ;;  %s32_s22 = int_to_ptr.vmem [resolvable:$true] %s31_s22 }
   0x5   :  { %p651_p1 = scmp.lt.u32.totalorder %s647_s25, %s951_s1 }
   0x7   :  { %p653_p2 = pnand %p651_p1, %p648_p0 }
   0x9   :  { %656 = shalt.err (!%p653_p2)
}
   0xa   :  { %s657_s30 = scalar_lea.vmem %s32_s22, 128  ;;  %p662_p4 = scmp.lt.s32.totalorder %s32_s22, %s32_s22 }
   0xb   :  { %p658_p3 = scmp.ne.s32.totalorder %s32_s22, %s657_s30  ;;  %p663_p5 = scmp.lt.s32.totalorder %s657_s30, %s657_s30 }
   0xd   :  { %p664_p6 = por %p663_p5, %p662_p4 }
   0xf   :  { %p665_p7 = pnand %p664_p6, %p658_p3 }
  0x11   :  { %668 = shalt.err (!%p665_p7)
}
  0x12   :  { %34 = dma.hbm_to_vmem [thread:$0]  %s951_s1, 128, %s32_s22, [#allocation7]  }
  0x13   :  { %s788_s9 = smov [#allocation9]   ;;  %s789_s11 = smov [#allocation3]  }
  0x14   :  { %s52_s10 = sshll.u32 %s788_s9, 4  ;;  %s21_s12 = sshll.u32 %s789_s11, 4  ;;  %s53_s10 = int_to_ptr.vmem [resolvable:$true] %s52_s10  ;;  %s22_s12 = int_to_ptr.vmem [resolvable:$true] %s21_s12 }
  0x15   :  { %s669_s15 = scalar_lea.hbm %s953_s3, 2048 }
  0x16   :  { %p670_p8 = scmp.ne.s32.totalorder %s953_s3, %s669_s15  ;;  %p673_p9 = scmp.lt.u32.totalorder %s669_s15, %s953_s3 }
  0x18   :  { %p675_p10 = pnand %p673_p9, %p670_p8 }
  0x1a   :  { %678 = shalt.err (!%p675_p10)
}
  0x1b   :  { %s679_s1 = scalar_lea.vmem %s53_s10, 2048  ;;  %p684_p12 = scmp.lt.s32.totalorder %s53_s10, %s53_s10 }
  0x1c   :  { %p680_p11 = scmp.ne.s32.totalorder %s53_s10, %s679_s1  ;;  %p685_p13 = scmp.lt.s32.totalorder %s679_s1, %s679_s1 }
  0x1e   :  { %p686_p0 = por %p685_p13, %p684_p12 }
  0x20   :  { %p687_p1 = pnand %p686_p0, %p680_p11 }
  0x22   :  { %690 = shalt.err (!%p687_p1)
}
  0x23   :  { %s790_s20 = smov 128   ;;  %s791_s21 = smov 8  }
  0x24   :  { %58 = dma.hbm_to_vmem [thread:$0]  %s953_s3, 2048, %s53_s10, [#allocation10], %s790_s20, %s790_s20, %s791_s21  }
  0x25   :  { %s691_s26 = scalar_lea.hbm %s950_s0, 128 }
  0x26   :  { %p692_p2 = scmp.ne.s32.totalorder %s950_s0, %s691_s26  ;;  %p695_p3 = scmp.lt.u32.totalorder %s691_s26, %s950_s0 }
  0x28   :  { %p697_p4 = pnand %p695_p3, %p692_p2 }
  0x2a   :  { %700 = shalt.err (!%p697_p4)
}
  0x2b   :  { %s701_s7 = scalar_lea.vmem %s22_s12, 128  ;;  %p706_p6 = scmp.lt.s32.totalorder %s22_s12, %s22_s12 }
  0x2c   :  { %p702_p5 = scmp.ne.s32.totalorder %s22_s12, %s701_s7  ;;  %p707_p7 = scmp.lt.s32.totalorder %s701_s7, %s701_s7 }
  0x2e   :  { %p708_p8 = por %p707_p7, %p706_p6 }
  0x30   :  { %p709_p9 = pnand %p708_p8, %p702_p5 }
  0x32   :  { %712 = shalt.err (!%p709_p9)
}
  0x33   :  { %24 = dma.hbm_to_vmem [thread:$0]  %s950_s0, 128, %s22_s12, [#allocation4]  }
  0x34   :  { %s792_s9 = smov [#allocation8]   ;;  %s793_s11 = smov [#allocation11]  }
  0x35   :  { %s40_s10 = sshll.u32 %s792_s9, 4  ;;  %s64_s13 = sshll.u32 %s793_s11, 4  ;;  %s41_s10 = int_to_ptr.vmem [resolvable:$true] %s40_s10  ;;  %s65_s13 = int_to_ptr.vmem [resolvable:$true] %s64_s13 }
  0x36   :  { %s713_s16 = scalar_lea.hbm %s952_s2, 2048 }
  0x37   :  { %p714_p10 = scmp.ne.s32.totalorder %s952_s2, %s713_s16  ;;  %p717_p11 = scmp.lt.u32.totalorder %s713_s16, %s952_s2 }
  0x39   :  { %p719_p12 = pnand %p717_p11, %p714_p10 }
  0x3b   :  { %722 = shalt.err (!%p719_p12)
}
  0x3c   :  { %s723_s0 = scalar_lea.vmem %s41_s10, 2048  ;;  %p728_p0 = scmp.lt.s32.totalorder %s41_s10, %s41_s10 }
  0x3d   :  { %p724_p13 = scmp.ne.s32.totalorder %s41_s10, %s723_s0  ;;  %p729_p1 = scmp.lt.s32.totalorder %s723_s0, %s723_s0 }
  0x3f   :  { %p730_p2 = por %p729_p1, %p728_p0 }
  0x41   :  { %p731_p3 = pnand %p730_p2, %p724_p13 }
  0x43   :  { %734 = shalt.err (!%p731_p3)
}
  0x44   :  { %46 = dma.hbm_to_vmem [thread:$0]  %s952_s2, 2048, %s41_s10, [#allocation7], %s790_s20, %s790_s20, %s791_s21  }
  0x45   :  { %s735_s25 = scalar_lea.hbm %s954_s4, 2048 }
  0x46   :  { %p736_p4 = scmp.ne.s32.totalorder %s954_s4, %s735_s25  ;;  %p739_p5 = scmp.lt.u32.totalorder %s735_s25, %s954_s4 }
  0x48   :  { %p741_p6 = pnand %p739_p5, %p736_p4 }
  0x4a   :  { %744 = shalt.err (!%p741_p6)
}
  0x4b   :  { %s745_s30 = scalar_lea.vmem %s65_s13, 2048  ;;  %p750_p8 = scmp.lt.s32.totalorder %s65_s13, %s65_s13 }
  0x4c   :  { %p746_p7 = scmp.ne.s32.totalorder %s65_s13, %s745_s30  ;;  %p751_p9 = scmp.lt.s32.totalorder %s745_s30, %s745_s30 }
  0x4e   :  { %p752_p10 = por %p751_p9, %p750_p8 }
  0x50   :  { %p753_p11 = pnand %p752_p10, %p746_p7 }
  0x52   :  { %756 = shalt.err (!%p753_p11)
}
  0x53   :  { %70 = dma.hbm_to_vmem [thread:$0]  %s954_s4, 2048, %s65_s13, [#allocation10], %s790_s20, %s790_s20, %s791_s21  }
  0x54   :  { %779 = dma.done.wait [#allocation4], 128  }
  0x55   :  { %780 = vsyncadd [#allocation4], 4294967168 }
  0x56   :  { %781 = dma.done.wait [#allocation7], 2176  }
  0x57   :  { %782 = vsyncadd [#allocation7], 4294965120 }
  0x58   :  { %783 = dma.done.wait [#allocation10], 4096  }
  0x59   :  { %784 = vsyncadd [#allocation10], 4294963200  ;;  %v794_v0 = vmov 0.0|0.0   ;;  %vm795_vm0 = vmmov 0   ;;  %v796_v1 = vmov 0.0   ;;  %vm90_vm1 = vcmask 261120  }
  0x5a   :  { %561 = vmatprep.subr.bf16.mxu0 %v794_v0  ;;  %585 = vmatprep.subr.bf16.mxu1 %v794_v0  ;;  %v89_v2 = vld [vmem:[#allocation6] sm:$0xff]  ;;  %v88_v3 = vld [vmem:[#allocation3] sm:$0xff]  ;;  %v114_v4 = vld [vmem:[#allocation8] sm:$0xff]  ;;  %s797_s4 = smov 32   ;;  %s798_s20 = smov 96   ;;  %vm96_vm2 = vcmask 523520  }
  0x5b   :  { %488 = vmatprep.mubr.msk.f32.mxu0 %vm795_vm0, %v796_v1  ;;  %523 = vmatprep.mubr.msk.f32.mxu1 %vm795_vm0, %v796_v1  ;;  %v98_v5 = vsub.f32 %v88_v3, %v89_v2  ;;  %v106_v6 = vmul.f32 %v89_v2, %v88_v3  ;;  %v115_v7 = vld [vmem:[#allocation8 + $0x8] sm:$0xff]  ;;  %v116_v8 = vld [vmem:[#allocation8 + $0x10] sm:$0xff]  ;;  %v117_v9 = vld [vmem:[#allocation8 + $0x18] sm:$0xff]  ;;  %91 = vst.msk [vmem:[#allocation2] sm:$0xff] %vm90_vm1, %v88_v3  ;;  %s799_s21 = smov 64   ;;  %vm104_vm3 = vcmask 785920  }
  0x5c   :  { %93 = vrot.lane.b32.xlu0 %v89_v2, %s797_s4  ;;  %v562_v10 = vpack.c.bf16 %v115_v7, %v114_v4  ;;  %v565_v12 = vpack.c.bf16 %v117_v9, %v116_v8  ;;  %v118_v13 = vld [vmem:[#allocation8 + $0x20] sm:$0xff]  ;;  %v119_v14 = vld [vmem:[#allocation8 + $0x28] sm:$0xff]  ;;  %v132_v17 = vld [vmem:[#allocation9 + $0x10] sm:$0xff]  ;;  %vm111_vm4 = vcmask 1048320  }
  0x5d   :  { %v99_v11 = vand.u32 2147483647, %v98_v5  ;;  %108 = vrot.lane.b32.xlu1 %v106_v6, %s798_s20  ;;  %v130_v15 = vld [vmem:[#allocation9] sm:$0xff]  ;;  %v131_v16 = vld [vmem:[#allocation9 + $0x8] sm:$0xff]  ;;  %v133_v19 = vld [vmem:[#allocation9 + $0x18] sm:$0xff]  ;;  %v568_v20 = vpack.c.bf16 %v119_v14, %v118_v13 }
  0x5e   :  { %563 = vmatpush3.bf16.msra.mxu0 %v562_v10  ;;  %v586_v18 = vpack.c.bf16 %v131_v16, %v130_v15  ;;  %v120_v21 = vld [vmem:[#allocation8 + $0x30] sm:$0xff]  ;;  %v121_v22 = vld [vmem:[#allocation8 + $0x38] sm:$0xff]  ;;  %v589_v23 = vpack.c.bf16 %v133_v19, %v132_v17  ;;  %v134_v24 = vld [vmem:[#allocation9 + $0x20] sm:$0xff]  ;;  %v163_v17 = vlaneseq }
  0x5f   :  { %564 = vmatprep.subr.bf16.mxu0 %v794_v0  ;;  %v135_v25 = vld [vmem:[#allocation9 + $0x28] sm:$0xff]  ;;  %v571_v26 = vpack.c.bf16 %v121_v22, %v120_v21  ;;  %v122_v27 = vld [vmem:[#allocation8 + $0x40] sm:$0xff]  ;;  %v136_v30 = vld [vmem:[#allocation9 + $0x30] sm:$0xff] }
  0x60   :  { %101 = vrot.lane.b32.xlu0 %v99_v11, %s799_s21  ;;  %587 = vmatpush3.bf16.msra.mxu1 %v586_v18  ;;  %v123_v28 = vld [vmem:[#allocation8 + $0x48] sm:$0xff]  ;;  %v592_v29 = vpack.c.bf16 %v135_v25, %v134_v24  ;;  %v137_v31 = vld [vmem:[#allocation9 + $0x38] sm:$0xff]  ;;  %v124_v33 = vld [vmem:[#allocation8 + $0x50] sm:$0xff]  ;;  %v164_v18 = vshrl.u32 %v163_v17, 7 }
  0x61   :  { %588 = vmatprep.subr.bf16.mxu1 %v794_v0  ;;  %v574_v32 = vpack.c.bf16 %v123_v28, %v122_v27  ;;  %v125_v34 = vld [vmem:[#allocation8 + $0x58] sm:$0xff]  ;;  %v595_v35 = vpack.c.bf16 %v137_v31, %v136_v30  ;;  %v138_v36 = vld [vmem:[#allocation9 + $0x40] sm:$0xff]  ;;  %v139_v37 = vld [vmem:[#allocation9 + $0x48] sm:$0xff] }
  0x62   :  { %566 = vmatpush3.bf16.msra.mxu0 %v565_v12  ;;  %v577_v38 = vpack.c.bf16 %v125_v34, %v124_v33  ;;  %v126_v39 = vld [vmem:[#allocation8 + $0x60] sm:$0xff]  ;;  %v127_v40 = vld [vmem:[#allocation8 + $0x68] sm:$0xff]  ;;  %v598_v41 = vpack.c.bf16 %v139_v37, %v138_v36  ;;  %v140_v42 = vld [vmem:[#allocation9 + $0x50] sm:$0xff]  ;;  %v165_v19 = vsub.s32 0, %v164_v18  ;;  %v315_v34 = vsub.s32 2, %v164_v18 }
  0x63   :  { %567 = vmatprep.subr.bf16.mxu0 %v794_v0  ;;  %v141_v43 = vld [vmem:[#allocation9 + $0x58] sm:$0xff]  ;;  %v580_v44 = vpack.c.bf16 %v127_v40, %v126_v39  ;;  %v128_v45 = vld [vmem:[#allocation8 + $0x70] sm:$0xff]  ;;  %v142_v48 = vld [vmem:[#allocation9 + $0x60] sm:$0xff] }
  0x64   :  { %590 = vmatpush3.bf16.msra.mxu1 %v589_v23  ;;  %v129_v46 = vld [vmem:[#allocation8 + $0x78] sm:$0xff]  ;;  %v601_v47 = vpack.c.bf16 %v141_v43, %v140_v42  ;;  %v143_v49 = vld [vmem:[#allocation9 + $0x68] sm:$0xff]  ;;  %v144_v56 = vld [vmem:[#allocation9 + $0x70] sm:$0xff] }
  0x65   :  { %591 = vmatprep.subr.bf16.mxu1 %v794_v0  ;;  %v583_v50 = vpack.c.bf16 %v129_v46, %v128_v45  ;;  %v604_v51 = vpack.c.bf16 %v143_v49, %v142_v48  ;;  %v145_v57 = vld [vmem:[#allocation9 + $0x78] sm:$0xff]  ;;  %v146_v59 = vld [vmem:[#allocation11] sm:$0xff]  ;;  %v147_v60 = vld [vmem:[#allocation11 + $0x8] sm:$0xff] }
  0x66   :  { %569 = vmatpush3.bf16.msra.mxu0 %v568_v20  ;;  %v607_v58 = vpack.c.bf16 %v145_v57, %v144_v56  ;;  %v148_v61 = vld [vmem:[#allocation11 + $0x10] sm:$0xff]  ;;  %v610_v62 = vpack.c.bf16 %v147_v60, %v146_v59  ;;  %v149_v63 = vld [vmem:[#allocation11 + $0x18] sm:$0xff]  ;;  %v150_v3 = vld [vmem:[#allocation11 + $0x20] sm:$0xff] }
  0x67   :  { %570 = vmatprep.subr.bf16.mxu0 %v794_v0  ;;  %v613_v2 = vpack.c.bf16 %v149_v63, %v148_v61  ;;  %v151_v4 = vld [vmem:[#allocation11 + $0x28] sm:$0xff]  ;;  %v153_v6 = vld [vmem:[#allocation11 + $0x38] sm:$0xff]  ;;  %v154_v8 = vld [vmem:[#allocation11 + $0x40] sm:$0xff] }
  0x68   :  { %593 = vmatpush3.bf16.msra.mxu1 %v592_v29  ;;  %v616_v5 = vpack.c.bf16 %v151_v4, %v150_v3  ;;  %v155_v9 = vld [vmem:[#allocation11 + $0x48] sm:$0xff]  ;;  %v156_v11 = vld [vmem:[#allocation11 + $0x50] sm:$0xff]  ;;  %v157_v12 = vld [vmem:[#allocation11 + $0x58] sm:$0xff]  ;;  %v240_v29 = vsub.s32 1, %v164_v18 }
  0x69   :  { %594 = vmatprep.subr.bf16.mxu1 %v794_v0  ;;  %v622_v10 = vpack.c.bf16 %v155_v9, %v154_v8  ;;  %v625_v13 = vpack.c.bf16 %v157_v12, %v156_v11  ;;  %v158_v14 = vld [vmem:[#allocation11 + $0x60] sm:$0xff]  ;;  %v159_v15 = vld [vmem:[#allocation11 + $0x68] sm:$0xff]  ;;  %v161_v27 = vld [vmem:[#allocation11 + $0x78] sm:$0xff] }
  0x6a   :  { %572 = vmatpush3.bf16.msra.mxu0 %v571_v26  ;;  %v628_v16 = vpack.c.bf16 %v159_v15, %v158_v14  ;;  %v113_v20 = vld [vmem:[%s955_s5] sm:$0x7]  ;;  %v160_v26 = vld [vmem:[#allocation11 + $0x70] sm:$0xff]  ;;  %s800_s5 = smov [#allocation12]  }
  0x6b   :  { %573 = vmatprep.subr.bf16.mxu0 %v794_v0  ;;  %v166_v21 = vrot.slane %v113_v20, %v165_v19  ;;  %v631_v28 = vpack.c.bf16 %v161_v27, %v160_v26  ;;  %v241_v30 = vrot.slane %v113_v20, %v240_v29  ;;  %s394_s9 = sshll.u32 %s800_s5, 4  ;;  %s395_s9 = int_to_ptr.vmem [resolvable:$true] %s394_s9 }
  0x6c   :  { %596 = vmatpush3.bf16.msra.mxu1 %v595_v35  ;;  %v316_v35 = vrot.slane %v113_v20, %v315_v34  ;;  %s757_s10 = scalar_lea.vmem %s395_s9, 128  ;;  %p762_p13 = scmp.lt.s32.totalorder %s395_s9, %s395_s9 }
  0x6d   :  { %597 = vmatprep.subr.bf16.mxu1 %v794_v0  ;;  %p758_p12 = scmp.ne.s32.totalorder %s395_s9, %s757_s10  ;;  %p763_p0 = scmp.lt.s32.totalorder %s757_s10, %s757_s10 }
  0x6e   :  { %575 = vmatpush3.bf16.msra.mxu0 %v574_v32 }
  0x6f   :  { %576 = vmatprep.subr.bf16.mxu0 %v794_v0  ;;  %p764_p1 = por %p763_p0, %p762_p13 }
  0x70   :  { %599 = vmatpush3.bf16.msra.mxu1 %v598_v41 }
  0x71   :  { %600 = vmatprep.subr.bf16.mxu1 %v794_v0  ;;  %p765_p2 = pnand %p764_p1, %p758_p12 }
  0x72   :  { %578 = vmatpush3.bf16.msra.mxu0 %v577_v38 }
  0x73   :  { %579 = vmatprep.subr.bf16.mxu0 %v794_v0 }
  0x74   :  { %602 = vmatpush3.bf16.msra.mxu1 %v601_v47 }
  0x75   :  { %603 = vmatprep.subr.bf16.mxu1 %v794_v0 }
  0x76   :  { %581 = vmatpush3.bf16.msra.mxu0 %v580_v44 }
  0x77   :  { %582 = vmatprep.subr.bf16.mxu0 %v794_v0 }
  0x78   :  { %605 = vmatpush3.bf16.msra.mxu1 %v604_v51 }
  0x79   :  { %606 = vmatprep.subr.bf16.mxu1 %v794_v0 }
  0x7a   :  { %584 = vmatpush3.bf16.msra.mxu0 %v583_v50 }
  0x7b   :  { %609 = vmatprep.subr.bf16.mxu0 %v794_v0 }
  0x7c   :  { %608 = vmatpush3.bf16.msra.mxu1 %v607_v58 }
  0xce   :  { %v94_v52 = vpop.permute.xlu0 %93 }
  0xcf   :  { %97 = vst.msk [vmem:[#allocation2] sm:$0xff] %vm96_vm2, %v94_v52  ;;  %v109_v53 = vpop.permute.xlu1 %108 }
  0xd2   :  { %v102_v54 = vpop.permute.xlu0 %101 }
  0xd3   :  { %105 = vst.msk [vmem:[#allocation2] sm:$0xff] %vm104_vm3, %v102_v54 }
  0xd4   :  { %112 = vst.msk [vmem:[#allocation2] sm:$0xff] %vm111_vm4, %v109_v53 }
  0xdb   :  { %v162_v55 = vld [vmem:[#allocation2] sm:$0xff] }
  0xdc   :  { %489 = vmatmul.mubr.f32.vlgmr.msra.gmra.mrb[0].mxu0 %v162_v55 }
  0xdd   :  { %558 = vmatprep.mubr.msk.f32.mxu0 %vm795_vm0, %v796_v1  ;;  %611 = vmatpush3.bf16.msra.mxu0 %v610_v62  ;;  %v152_v1 = vld [vmem:[#allocation11 + $0x30] sm:$0xff] }
  0xde   :  { %612 = vmatprep.subr.bf16.mxu0 %v794_v0  ;;  %v619_v7 = vpack.c.bf16 %v153_v6, %v152_v1 }
  0xe1   :  { %614 = vmatpush3.bf16.msra.mxu0 %v613_v2 }
  0xe2   :  { %615 = vmatprep.subr.bf16.mxu0 %v794_v0 }
  0xe5   :  { %617 = vmatpush3.bf16.msra.mxu0 %v616_v5 }
  0xe6   :  { %618 = vmatprep.subr.bf16.mxu0 %v794_v0 }
  0xe9   :  { %620 = vmatpush3.bf16.msra.mxu0 %v619_v7 }
  0xea   :  { %621 = vmatprep.subr.bf16.mxu0 %v794_v0 }
  0xed   :  { %623 = vmatpush3.bf16.msra.mxu0 %v622_v10 }
  0xee   :  { %624 = vmatprep.subr.bf16.mxu0 %v794_v0 }
  0xf1   :  { %626 = vmatpush3.bf16.msra.mxu0 %v625_v13 }
  0xf2   :  { %627 = vmatprep.subr.bf16.mxu0 %v794_v0 }
  0xf5   :  { %629 = vmatpush3.bf16.msra.mxu0 %v628_v16 }
  0xf6   :  { %630 = vmatprep.subr.bf16.mxu0 %v794_v0 }
  0xf9   :  { %632 = vmatpush3.bf16.msra.mxu0 %v631_v28 }
 0x1af   :  { %v233_v22 = vpop.f32.mrb[0].mxu0 }
 0x1b0   :  { %v234_v23 = vadd.f32 %v233_v22, %v166_v21  ;;  %v490_v24 = vpop.f32.mrb[1].mxu0 }
 0x1b2   :  { %v237_v25 = vmax.f32 %v234_v23, 0.0 }
 0x1b4   :  { %524 = vmatmul.mubr.f32.vlgmr.msra.gmra.mrb[0].mxu1 %v237_v25 }
 0x287   :  { %v308_v0 = vpop.f32.mrb[0].mxu1 }
 0x288   :  { %v309_v31 = vadd.f32 %v308_v0, %v241_v30  ;;  %v525_v32 = vpop.f32.mrb[1].mxu1 }
 0x28a   :  { %v312_v33 = vmax.f32 %v309_v31, 0.0 }
 0x28c   :  { %559 = vmatmul.mubr.f32.vlgmr.msra.gmra.mrb[2].mxu0 %v312_v33 }
 0x35f   :  { %v383_v36 = vpop.f32.mrb[2].mxu0 }
 0x360   :  { %v384_v37 = vadd.f32 %v383_v36, %v316_v35  ;;  %v560_v38 = vpop.f32.mrb[3].mxu0 }
 0x362   :  { %387 = vst [vmem:[#allocation12] sm:$0xff] %v384_v37 }
 0x363   :  { %768 = shalt.err (!%p765_p2)
}
 0x364   :  { %s769_s14 = scalar_lea.hbm %s956_s6, 128 }
 0x365   :  { %p770_p3 = scmp.ne.s32.totalorder %s956_s6, %s769_s14  ;;  %p773_p4 = scmp.lt.u32.totalorder %s769_s14, %s956_s6 }
 0x367   :  { %p775_p5 = pnand %p773_p4, %p770_p3 }
 0x369   :  { %778 = shalt.err (!%p775_p5)
}
 0x36a   :  { %397 = dma.vmem_to_hbm [thread:$0]  %s395_s9, 128, %s956_s6, [#allocation5]  }
 0x36b   :  { %785 = dma.done.wait [#allocation5], 128  }
 0x36c   :  { %786 = vsyncadd [#allocation5], 4294967168 }
 0x36d   :  { %401 = vsyncpa [#allocation4], 1 }
 0x36e   :  { %402 = vsyncpa [#allocation7], 1 }
 0x36f   :  { %403 = vsyncpa [#allocation10], 1 }
 0x370   :  { %404 = vsyncpa [#allocation5], 1 }

</bundles_post_ra>
